<compile_context>
chip_gen: v7x
topology: tpu7x:2x2x1
jax: 0.10.0
libtpu: 0.0.40
codegen_flags: <defaults>
</compile_context>

<pallas_src>
import jax
import jax.numpy as jnp
from jax.experimental import pallas as pl
from jax.experimental.pallas import tpu as pltpu

STATE_SIZE = 3
ACTION_SIZE = 2
HIDDEN = 24
LANES = 128

# f32 head slab layout ((HEAD_ROWS, 128), zero-padded elsewhere):
#   rows 0:3  fc1 weight rows (lanes 0:24)
#   row  3    fc1 bias        (lanes 0:24)
#   row  4    fc2 bias        (lanes 0:24)
#   row  5    fc3 bias        (lanes 0:2)
#   rows 6:8  zero (sublane padding)
HEAD_ROWS = 8
# bf16 weight slab layout ((2*128, 128), zero-padded elsewhere):
#   rows   0:128  fc2 weight block (real rows 0:24,   lanes 0:24)
#   rows 128:256  fc3 weight block (real rows 128:152, lanes 0:2)
W2_ROW0 = 0
W3_ROW0 = LANES
WSLAB_ROWS = 2 * LANES


def dqn_kernel(x_ref, head_ref, w_ref, o_ref):
    x = x_ref[...]                                            # (tb, 3) f32

    # ---- fc1 (K=3): f32 VPU broadcast-FMAs (no MXU fill/drain for a 3-deep
    # contraction).  Zero padding of w1/b1 lanes 24:127 keeps those lanes
    # exactly 0 through the ReLU, so the 128-lane fc2 contraction is exact.
    # TODO(synk): bundle-dump A/B the MXU alternative ((tb,8)x(8,128) bf16
    # matmul on a ones-augmented x, biases folded into a constant-1 lane).
    h = (x[:, 0:1] * head_ref[0:1, :]
         + x[:, 1:2] * head_ref[1:2, :]
         + x[:, 2:3] * head_ref[2:3, :]
         + head_ref[3:4, :])
    h = jnp.maximum(h, 0.0)                                   # (tb, 128) f32

    # ---- fc2 + ReLU: bf16 operands on the MXU, f32 accumulation, f32 bias.
    h = jnp.dot(h.astype(w_ref.dtype), w_ref[W2_ROW0:W2_ROW0 + LANES, :],
                preferred_element_type=jnp.float32) + head_ref[4:5, :]
    h = jnp.maximum(h, 0.0)                                   # (tb, 128) f32

    # ---- fc3: bf16 operands on the MXU, f32 accumulation, f32 bias.
    q = jnp.dot(h.astype(w_ref.dtype), w_ref[W3_ROW0:W3_ROW0 + LANES, :],
                preferred_element_type=jnp.float32) + head_ref[5:6, :]

    # Lane-dense store of the full (tb, 128) block (lanes 2:127 are exact
    # zeros thanks to the zero-padded w3/b3); the wrapper slices [:, :2].
    o_ref[...] = q.astype(o_ref.dtype)


def _round_up(n, m):
    return ((n + m - 1) // m) * m


def _choose_tb(batch, block_batch):
    """Sublane-aligned batch tile.  Single-tile batches of >= 1024 rows are
    split in two so ("parallel",) semantics feed both v7x TensorCores."""
    p8 = _round_up(max(batch, 1), 8)
    if p8 > block_batch:
        return block_batch
    if p8 >= 1024:
        return _round_up((p8 + 1) // 2, 8)
    return p8


def dqn_forward(x, head, w_slab, *, block_batch=2048):
    """x: (B, 3) f32; head: (8, 128) f32; w_slab: (256, 128) bf16 (or f32)."""
    B = x.shape[0]
    tb = _choose_tb(B, block_batch)
    padded = _round_up(B, tb)
    if padded != B:
        x = jnp.pad(x, ((0, padded - B), (0, 0)))
    grid = (padded // tb,)

    # Advisory cost: padded MXU work actually executed + lane-dense I/O.
    flops = 2 * padded * (2 * LANES * LANES + STATE_SIZE * LANES)
    bytes_accessed = (padded * STATE_SIZE * 4 + padded * LANES * 4
                      + HEAD_ROWS * LANES * 4
                      + WSLAB_ROWS * LANES * jnp.dtype(w_slab.dtype).itemsize)

    out = pl.pallas_call(
        dqn_kernel,
        out_shape=jax.ShapeDtypeStruct((padded, LANES), jnp.float32),
        grid_spec=pltpu.PrefetchScalarGridSpec(
            num_scalar_prefetch=0,
            grid=grid,
            in_specs=[
                pl.BlockSpec((tb, STATE_SIZE), lambda i: (i, 0)),
                # Constant index maps -> both param slabs stay VMEM-resident.
                pl.BlockSpec((HEAD_ROWS, LANES), lambda i: (0, 0)),
                pl.BlockSpec((WSLAB_ROWS, LANES), lambda i: (0, 0)),
            ],
            out_specs=pl.BlockSpec((tb, LANES), lambda i: (i, 0)),
        ),
        compiler_params=pltpu.CompilerParams(
            dimension_semantics=("parallel",),        # megacore sharding on v7x
            vmem_limit_bytes=32 * 1024 * 1024),       # lifts v5e's 16 MiB default
        cost_estimate=pl.CostEstimate(
            flops=flops, transcendentals=0, bytes_accessed=bytes_accessed),
    )(x, head, w_slab)
    return out[:B, :ACTION_SIZE]


def init_params(key):
    """Mimics PyTorch nn.Linear default init U(-1/sqrt(fan_in), +1/sqrt(fan_in)).
    Weights stored transposed: (in_features, out_features)."""
    def linear(key, fan_in, fan_out):
        kw, kb = jax.random.split(key)
        bound = 1.0 / jnp.sqrt(float(fan_in))
        w = jax.random.uniform(kw, (fan_in, fan_out), jnp.float32, -bound, bound)
        b = jax.random.uniform(kb, (1, fan_out), jnp.float32, -bound, bound)
        return w, b

    k1, k2, k3 = jax.random.split(key, 3)
    w1, b1 = linear(k1, STATE_SIZE, HIDDEN)
    w2, b2 = linear(k2, HIDDEN, HIDDEN)
    w3, b3 = linear(k3, HIDDEN, ACTION_SIZE)
    return {"w1": w1, "b1": b1, "w2": w2, "b2": b2, "w3": w3, "b3": b3}


def pack_head(p):
    """f32 head slab: fc1 weight rows + all biases, zero-padded to (8, 128)."""
    head = jnp.zeros((HEAD_ROWS, LANES), jnp.float32)
    head = head.at[0:STATE_SIZE, 0:HIDDEN].set(p["w1"])
    head = head.at[3, 0:HIDDEN].set(p["b1"][0])
    head = head.at[4, 0:HIDDEN].set(p["b2"][0])
    head = head.at[5, 0:ACTION_SIZE].set(p["b3"][0])
    return head


def pack_weight_slab(p, dtype=jnp.bfloat16):
    """MXU weight slab: zero-padded 128x128 fc2 and fc3 blocks stacked to
    (256, 128), stored in `dtype` (bf16 fast path, f32 exact path)."""
    w = jnp.zeros((WSLAB_ROWS, LANES), jnp.float32)
    w = w.at[W2_ROW0:W2_ROW0 + HIDDEN, 0:HIDDEN].set(p["w2"])
    w = w.at[W3_ROW0:W3_ROW0 + HIDDEN, 0:ACTION_SIZE].set(p["w3"])
    return w.astype(dtype)


def reference_forward(x, p):
    h = jnp.maximum(x @ p["w1"] + p["b1"], 0.0)
    h = jnp.maximum(h @ p["w2"] + p["b2"], 0.0)
    return h @ p["w3"] + p["b3"]


if __name__ == "__main__":
    key = jax.random.PRNGKey(0)
    k_params, k_x1, k_x2 = jax.random.split(key, 3)

    params = init_params(k_params)
    head = pack_head(params)
    w_bf16 = pack_weight_slab(params, jnp.bfloat16)   # fast path
    w_f32 = pack_weight_slab(params, jnp.float32)     # exact-match path

    # Small canonical case: batch=8, single grid step, bf16 MXU operands.
    batch = 8
    x = jax.random.normal(k_x1, (batch, STATE_SIZE), jnp.float32)
    ref = reference_forward(x, params)

    out = jax.block_until_ready(dqn_forward(x, head, w_bf16))
    assert out.shape == (batch, ACTION_SIZE)
    assert jnp.allclose(out, ref, atol=2e-2, rtol=2e-2), \
        "bf16 path mismatch vs JAX reference (B=8)"

    # Same kernel with the f32 weight slab must match the reference exactly.
    out_exact = jax.block_until_ready(dqn_forward(x, head, w_f32))
    assert jnp.allclose(out_exact, ref, atol=1e-5, rtol=1e-5), \
        "f32 exact path mismatch vs JAX reference (B=8)"

    # Exercise the multi-step batch grid + tail padding path (3 grid steps).
    batch2 = 40
    x2 = jax.random.normal(k_x2, (batch2, STATE_SIZE), jnp.float32)
    out2 = jax.block_until_ready(dqn_forward(x2, head, w_bf16, block_batch=16))
    ref2 = reference_forward(x2, params)
    assert out2.shape == (batch2, ACTION_SIZE)
    assert jnp.allclose(out2, ref2, atol=2e-2, rtol=2e-2), \
        "bf16 path mismatch vs JAX reference (B=40, grid=3)"

    print("KERNEL_OK")
</pallas_src>

<mosaic_0001>
module attributes {stable_mosaic.version = 11 : i64} {
  func.func @dqn_kernel(%arg0: i32, %arg1: memref<8x3xf32, #tpu.memory_space<vmem>>, %arg2: memref<8x128xf32, #tpu.memory_space<vmem>>, %arg3: memref<256x128xbf16, #tpu.memory_space<vmem>>, %arg4: memref<8x128xf32, #tpu.memory_space<vmem>>) attributes {dimension_semantics = [#tpu.dimension_semantics<parallel>], iteration_bounds = array<i64: 1>, scalar_prefetch = 0 : i64, scratch_operands = 0 : i64, tpu.core_type = #tpu.core_type<tc>, window_params = [{transform_indices = @transform_0, window_bounds = array<i64: 8, 3>}, {pipeline_mode = #tpu.pipeline_mode<synchronous>, transform_indices = @transform_1, window_bounds = array<i64: 8, 128>}, {pipeline_mode = #tpu.pipeline_mode<synchronous>, transform_indices = @transform_2, window_bounds = array<i64: 256, 128>}, {transform_indices = @transform_3, window_bounds = array<i64: 8, 128>}]} {
    %c0 = arith.constant 0 : index
    %c0_0 = arith.constant 0 : index
    %0 = vector.load %arg1[%c0, %c0_0] : memref<8x3xf32, #tpu.memory_space<vmem>>, vector<8x3xf32>
    %1 = vector.extract_strided_slice %0 {offsets = [0, 0], sizes = [8, 1], strides = [1, 1]} : vector<8x3xf32> to vector<8x1xf32>
    %c0_1 = arith.constant 0 : index
    %c0_2 = arith.constant 0 : index
    %2 = vector.load %arg2[%c0_1, %c0_2] : memref<8x128xf32, #tpu.memory_space<vmem>>, vector<1x128xf32>
    %3 = vector.broadcast %1 : vector<8x1xf32> to vector<8x128xf32>
    %4 = vector.broadcast %2 : vector<1x128xf32> to vector<8x128xf32>
    %5 = arith.mulf %3, %4 : vector<8x128xf32>
    %6 = vector.extract_strided_slice %0 {offsets = [0, 1], sizes = [8, 1], strides = [1, 1]} : vector<8x3xf32> to vector<8x1xf32>
    %c1 = arith.constant 1 : index
    %c0_3 = arith.constant 0 : index
    %7 = vector.load %arg2[%c1, %c0_3] : memref<8x128xf32, #tpu.memory_space<vmem>>, vector<1x128xf32>
    %8 = vector.broadcast %6 : vector<8x1xf32> to vector<8x128xf32>
    %9 = vector.broadcast %7 : vector<1x128xf32> to vector<8x128xf32>
    %10 = arith.mulf %8, %9 : vector<8x128xf32>
    %11 = arith.addf %5, %10 : vector<8x128xf32>
    %12 = vector.extract_strided_slice %0 {offsets = [0, 2], sizes = [8, 1], strides = [1, 1]} : vector<8x3xf32> to vector<8x1xf32>
    %c2 = arith.constant 2 : index
    %c0_4 = arith.constant 0 : index
    %13 = vector.load %arg2[%c2, %c0_4] : memref<8x128xf32, #tpu.memory_space<vmem>>, vector<1x128xf32>
    %14 = vector.broadcast %12 : vector<8x1xf32> to vector<8x128xf32>
    %15 = vector.broadcast %13 : vector<1x128xf32> to vector<8x128xf32>
    %16 = arith.mulf %14, %15 : vector<8x128xf32>
    %17 = arith.addf %11, %16 : vector<8x128xf32>
    %c3 = arith.constant 3 : index
    %c0_5 = arith.constant 0 : index
    %18 = vector.load %arg2[%c3, %c0_5] : memref<8x128xf32, #tpu.memory_space<vmem>>, vector<1x128xf32>
    %19 = vector.broadcast %18 : vector<1x128xf32> to vector<8x128xf32>
    %20 = arith.addf %17, %19 : vector<8x128xf32>
    %cst = arith.constant 0.000000e+00 : f32
    %21 = vector.broadcast %cst : f32 to vector<8x128xf32>
    %22 = arith.maximumf %20, %21 : vector<8x128xf32>
    %23 = arith.truncf %22 : vector<8x128xf32> to vector<8x128xbf16>
    %c0_6 = arith.constant 0 : index
    %c0_7 = arith.constant 0 : index
    %24 = vector.load %arg3[%c0_6, %c0_7] : memref<256x128xbf16, #tpu.memory_space<vmem>>, vector<128x128xbf16>
    %cst_8 = arith.constant dense<0.000000e+00> : vector<8x128xf32>
    %25 = tpu.matmul %23, %24, %cst_8 {dimension_numbers = #tpu.dot_dimension_numbers<[1], [0], [0], [1], [0, 0, 1, 1], [], []>} : vector<8x128xbf16>, vector<128x128xbf16>, vector<8x128xf32> -> vector<8x128xf32>
    %c4 = arith.constant 4 : index
    %c0_9 = arith.constant 0 : index
    %26 = vector.load %arg2[%c4, %c0_9] : memref<8x128xf32, #tpu.memory_space<vmem>>, vector<1x128xf32>
    %27 = vector.broadcast %26 : vector<1x128xf32> to vector<8x128xf32>
    %28 = arith.addf %25, %27 : vector<8x128xf32>
    %cst_10 = arith.constant 0.000000e+00 : f32
    %29 = vector.broadcast %cst_10 : f32 to vector<8x128xf32>
    %30 = arith.maximumf %28, %29 : vector<8x128xf32>
    %31 = arith.truncf %30 : vector<8x128xf32> to vector<8x128xbf16>
    %c128 = arith.constant 128 : index
    %c0_11 = arith.constant 0 : index
    %32 = vector.load %arg3[%c128, %c0_11] : memref<256x128xbf16, #tpu.memory_space<vmem>>, vector<128x128xbf16>
    %cst_12 = arith.constant dense<0.000000e+00> : vector<8x128xf32>
    %33 = tpu.matmul %31, %32, %cst_12 {dimension_numbers = #tpu.dot_dimension_numbers<[1], [0], [0], [1], [0, 0, 1, 1], [], []>} : vector<8x128xbf16>, vector<128x128xbf16>, vector<8x128xf32> -> vector<8x128xf32>
    %c5 = arith.constant 5 : index
    %c0_13 = arith.constant 0 : index
    %34 = vector.load %arg2[%c5, %c0_13] : memref<8x128xf32, #tpu.memory_space<vmem>>, vector<1x128xf32>
    %35 = vector.broadcast %34 : vector<1x128xf32> to vector<8x128xf32>
    %36 = arith.addf %33, %35 : vector<8x128xf32>
    %c0_14 = arith.constant 0 : index
    %c0_15 = arith.constant 0 : index
    %37 = vector.load %arg4[%c0_14, %c0_15] : memref<8x128xf32, #tpu.memory_space<vmem>>, vector<8x128xf32>
    tpu.vector_store %arg4[%c0_14, %c0_15], %36 {strides = array<i32>} : memref<8x128xf32, #tpu.memory_space<vmem>>, vector<8x128xf32>,
    return
  }
  func.func @transform_0(%arg0: i32) -> (i32, i32) {
    %c0_i32 = arith.constant 0 : i32
    %c0_i32_0 = arith.constant 0 : i32
    return %arg0, %c0_i32 : i32, i32
  }
  func.func @transform_1(%arg0: i32) -> (i32, i32) {
    %c0_i32 = arith.constant 0 : i32
    %c0_i32_0 = arith.constant 0 : i32
    %c0_i32_1 = arith.constant 0 : i32
    return %c0_i32, %c0_i32_0 : i32, i32
  }
  func.func @transform_2(%arg0: i32) -> (i32, i32) {
    %c0_i32 = arith.constant 0 : i32
    %c0_i32_0 = arith.constant 0 : i32
    %c0_i32_1 = arith.constant 0 : i32
    return %c0_i32, %c0_i32_0 : i32, i32
  }
  func.func @transform_3(%arg0: i32) -> (i32, i32) {
    %c0_i32 = arith.constant 0 : i32
    %c0_i32_0 = arith.constant 0 : i32
    return %arg0, %c0_i32 : i32, i32
  }
}

</mosaic_0001>

<bundles_post_ra>
// kernel: tpu_custom_call.1
= control target key start
LH: loop header
LB: loop body
LE: loop exit
PB: predicated region body
PF: predicated region fallthrough
CT: control target
= control target key end

     0   :  { %8 = vsyncpa [#allocation3], 0  ;;  %s557_s0 = inlined_call_operand.vmem [shape: f32[8,3], index: 0, kind: input, shape index: {}]   ;;  %s558_s1 = inlined_call_operand.vmem [shape: f32[8,128], index: 1, kind: input, shape index: {}]   ;;  %s559_s2 = inlined_call_operand.hbm [shape: bf16[256,128], index: 2, kind: input, shape index: {}]   ;;  %s560_s3 = inlined_call_operand.hbm [shape: f32[8,128], index: 3, kind: output, shape index: {}]  }
   0x1   :  { %9 = vsyncpa [#allocation4], 0  ;;  %s465_s12 = smov [#allocation2]   ;;  %s417_s16 = scalar_lea.hbm %s559_s2, 2048 }
   0x2   :  { %s19_s13 = sshll.u32 %s465_s12, 4  ;;  %p418_p0 = scmp.ne.s32.totalorder %s559_s2, %s417_s16  ;;  %s20_s13 = int_to_ptr.vmem [resolvable:$true] %s19_s13 }
   0x3   :  { %p421_p1 = scmp.lt.u32.totalorder %s417_s16, %s559_s2 }
   0x5   :  { %p423_p2 = pnand %p421_p1, %p418_p0 }
   0x7   :  { %426 = shalt.err (!%p423_p2)
}
   0x8   :  { %s427_s21 = scalar_lea.vmem %s20_s13, 2048  ;;  %p432_p4 = scmp.lt.s32.totalorder %s20_s13, %s20_s13 }
   0x9   :  { %p428_p3 = scmp.ne.s32.totalorder %s20_s13, %s427_s21  ;;  %p433_p5 = scmp.lt.s32.totalorder %s427_s21, %s427_s21 }
   0xb   :  { %p434_p6 = por %p433_p5, %p432_p4 }
   0xd   :  { %p435_p7 = pnand %p434_p6, %p428_p3 }
   0xf   :  { %438 = shalt.err (!%p435_p7)
}
  0x10   :  { %s466_s22 = smov 64   ;;  %s467_s23 = smov 4  }
  0x11   :  { %25 = dma.hbm_to_vmem [thread:$0]  %s559_s2, 2048, %s20_s13, [#allocation3], %s466_s22, %s466_s22, %s467_s23  }
  0x12   :  { %461 = dma.done.wait [#allocation3], 2048  }
  0x13   :  { %462 = vsyncadd [#allocation3], 4294965248  ;;  %v468_v0 = vmov 0   ;;  %v469_v1 = vmov 2   ;;  %v470_v2 = vmov 0.0   ;;  %v30_v3 = vld [vmem:[%s557_s0] sm:$0xff] }
  0x14   :  { %397 = vset.pattern.permute.xlu0 %v468_v0  ;;  %399 = vset.pattern.permute.xlu1 %v469_v1  ;;  %v401_v4 = vld [vmem:[#allocation2] sm:$0xff]   ;;  %v402_v5 = vld [vmem:[#allocation2 + $0x8] sm:$0xff]   ;;  %v471_v6 = vmov 1   ;;  %v403_v7 = vld [vmem:[#allocation2 + $0x10] sm:$0xff]   ;;  %vm472_vm0 = vmmov 0   ;;  %s473_s11 = smov [#allocation5]  }
  0x15   :  { %348 = vmatprep.subr.bf16.mxu0 %v470_v2  ;;  %368 = vmatprep.subr.bf16.mxu1 %v470_v2  ;;  %v404_v8 = vld [vmem:[#allocation2 + $0x18] sm:$0xff]   ;;  %v405_v9 = vld [vmem:[#allocation2 + $0x20] sm:$0xff]   ;;  %v406_v11 = vld [vmem:[#allocation2 + $0x28] sm:$0xff]   ;;  %s299_s12 = sshll.u32 %s473_s11, 4  ;;  %s300_s12 = int_to_ptr.vmem [resolvable:$true] %s299_s12 }
  0x16   :  { %34 = vperm.xlu0 %397, %v30_v3   ;;  %55 = vperm.xlu1 %399, %v30_v3   ;;  %v409_v10 = vld [vmem:[#allocation2 + $0x40] sm:$0xff]   ;;  %v410_v12 = vld [vmem:[#allocation2 + $0x48] sm:$0xff]   ;;  %v407_v13 = vld [vmem:[#allocation2 + $0x30] sm:$0xff]   ;;  %s439_s13 = scalar_lea.vmem %s300_s12, 128  ;;  %p444_p9 = scmp.lt.s32.totalorder %s300_s12, %s300_s12 }
  0x17   :  { %349 = vmatpush3.bf16.msra.mxu0 %v401_v4  ;;  %364 = vmatprep.mubr.msk.bf16.mxu0 %vm472_vm0, %v470_v2  ;;  %v411_v14 = vld [vmem:[#allocation2 + $0x50] sm:$0xff]   ;;  %v408_v15 = vld [vmem:[#allocation2 + $0x38] sm:$0xff]   ;;  %v413_v17 = vld [vmem:[#allocation2 + $0x60] sm:$0xff]   ;;  %p440_p8 = scmp.ne.s32.totalorder %s300_s12, %s439_s13  ;;  %p445_p10 = scmp.lt.s32.totalorder %s439_s13, %s439_s13 }
  0x18   :  { %350 = vmatprep.subr.bf16.mxu0 %v470_v2  ;;  %384 = vmatprep.mubr.msk.bf16.mxu1 %vm472_vm0, %v470_v2  ;;  %v412_v16 = vld [vmem:[#allocation2 + $0x58] sm:$0xff]   ;;  %v414_v18 = vld [vmem:[#allocation2 + $0x68] sm:$0xff]   ;;  %v308_v20 = vld [vmem:[%s558_s1] ss:$0 sm:$0xff] }
  0x19   :  { %369 = vmatpush3.bf16.msra.mxu1 %v409_v10  ;;  %v309_v21 = vld [vmem:[%s558_s1 + $0x1] ss:$0 sm:$0xff]  ;;  %v310_v22 = vld [vmem:[%s558_s1 + $0x2] ss:$0 sm:$0xff]  ;;  %v311_v29 = vld [vmem:[%s558_s1 + $0x3] ss:$0 sm:$0xff]  ;;  %p446_p11 = por %p445_p10, %p444_p9 }
  0x1a   :  { %398 = vset.pattern.permute.xlu0 %v471_v6  ;;  %370 = vmatprep.subr.bf16.mxu1 %v470_v2  ;;  %v415_v34 = vld [vmem:[#allocation2 + $0x70] sm:$0xff]   ;;  %v416_v35 = vld [vmem:[#allocation2 + $0x78] sm:$0xff]  }
  0x1b   :  { %44 = vperm.xlu0 %398, %v30_v3   ;;  %351 = vmatpush3.bf16.msra.mxu0 %v402_v5  ;;  %v312_v36 = vld [vmem:[%s558_s1 + $0x4] ss:$0 sm:$0xff]  ;;  %v321_v44 = vld [vmem:[%s558_s1 + $0x5] ss:$0 sm:$0xff]  ;;  %p447_p12 = pnand %p446_p11, %p440_p8 }
  0x1c   :  { %352 = vmatprep.subr.bf16.mxu0 %v470_v2 }
  0x1d   :  { %371 = vmatpush3.bf16.msra.mxu1 %v410_v12 }
  0x1e   :  { %372 = vmatprep.subr.bf16.mxu1 %v470_v2 }
  0x1f   :  { %400 = vset.pattern.permute.xlu0 %v469_v1  ;;  %353 = vmatpush3.bf16.msra.mxu0 %v403_v7 }
  0x20   :  { %354 = vmatprep.subr.bf16.mxu0 %v470_v2 }
  0x21   :  { %373 = vmatpush3.bf16.msra.mxu1 %v411_v14 }
  0x22   :  { %374 = vmatprep.subr.bf16.mxu1 %v470_v2 }
  0x23   :  { %355 = vmatpush3.bf16.msra.mxu0 %v404_v8 }
  0x24   :  { %356 = vmatprep.subr.bf16.mxu0 %v470_v2 }
  0x25   :  { %375 = vmatpush3.bf16.msra.mxu1 %v412_v16 }
  0x26   :  { %376 = vmatprep.subr.bf16.mxu1 %v470_v2 }
  0x27   :  { %357 = vmatpush3.bf16.msra.mxu0 %v405_v9 }
  0x28   :  { %358 = vmatprep.subr.bf16.mxu0 %v470_v2 }
  0x29   :  { %377 = vmatpush3.bf16.msra.mxu1 %v413_v17 }
  0x2a   :  { %378 = vmatprep.subr.bf16.mxu1 %v470_v2 }
  0x2b   :  { %359 = vmatpush3.bf16.msra.mxu0 %v406_v11 }
  0x2c   :  { %360 = vmatprep.subr.bf16.mxu0 %v470_v2 }
  0x2d   :  { %379 = vmatpush3.bf16.msra.mxu1 %v414_v18 }
  0x2e   :  { %380 = vmatprep.subr.bf16.mxu1 %v470_v2 }
  0x2f   :  { %361 = vmatpush3.bf16.msra.mxu0 %v407_v13 }
  0x30   :  { %362 = vmatprep.subr.bf16.mxu0 %v470_v2 }
  0x31   :  { %381 = vmatpush3.bf16.msra.mxu1 %v415_v34 }
  0x32   :  { %382 = vmatprep.subr.bf16.mxu1 %v470_v2 }
  0x33   :  { %363 = vmatpush3.bf16.msra.mxu0 %v408_v15 }
  0x35   :  { %383 = vmatpush3.bf16.msra.mxu1 %v416_v35 }
  0x95   :  { %v35_v19 = vpop.permute.xlu0 %34  ;;  %v56_v23 = vpop.permute.xlu1 %55 }
  0x96   :  { %v41_v25 = vmul.f32 %v308_v20, %v35_v19  ;;  %v62_v27 = vmul.f32 %v310_v22, %v56_v23 }
  0x9a   :  { %v45_v24 = vpop.permute.xlu0 %44 }
  0x9b   :  { %v51_v26 = vmul.f32 %v309_v21, %v45_v24 }
  0x9d   :  { %v52_v28 = vadd.f32 %v51_v26, %v41_v25 }
  0x9f   :  { %v63_v30 = vadd.f32 %v62_v27, %v52_v28 }
  0xa1   :  { %v69_v31 = vadd.f32 %v311_v29, %v63_v30 }
  0xa3   :  { %v70_v32 = vmax.f32 %v69_v31, 0.0 }
  0xa5   :  { %v71_v33 = vpack.c.bf16 %v70_v32, %v70_v32 }
  0xa7   :  { %365 = vmatmul.mubr.bf16.vlgmr.msra.gmra.mrb[0].mxu0 %v71_v33 }
 0x17a   :  { %v175_v37 = vpop.f32.mrb[0].mxu0 }
 0x17b   :  { %v176_v38 = vadd.f32 %v312_v36, %v175_v37  ;;  %v366_v39 = vpop.f32.mrb[1].mxu0 }
 0x17c   :  { %v178_v40 = vpop.f32.mrb[2].mxu0 }
 0x17d   :  { %v181_v41 = vmax.f32 %v176_v38, 0.0  ;;  %v367_v42 = vpop.f32.mrb[3].mxu0 }
 0x17f   :  { %v182_v43 = vpack.c.bf16 %v181_v41, %v181_v41 }
 0x181   :  { %385 = vmatmul.mubr.bf16.vlgmr.msra.gmra.mrb[0].mxu1 %v182_v43 }
 0x254   :  { %v286_v45 = vpop.f32.mrb[0].mxu1 }
 0x255   :  { %v287_v46 = vadd.f32 %v321_v44, %v286_v45  ;;  %v386_v47 = vpop.f32.mrb[1].mxu1 }
 0x256   :  { %v289_v48 = vpop.f32.mrb[2].mxu1 }
 0x257   :  { %292 = vst [vmem:[#allocation5] sm:$0xff] %v287_v46  ;;  %v387_v49 = vpop.f32.mrb[3].mxu1 }
 0x258   :  { %450 = shalt.err (!%p447_p12)
}
 0x259   :  { %s451_s1 = scalar_lea.hbm %s560_s3, 128 }
 0x25a   :  { %p452_p13 = scmp.ne.s32.totalorder %s560_s3, %s451_s1  ;;  %p455_p0 = scmp.lt.u32.totalorder %s451_s1, %s560_s3 }
 0x25c   :  { %p457_p1 = pnand %p455_p0, %p452_p13 }
 0x25e   :  { %460 = shalt.err (!%p457_p1)
}
 0x25f   :  { %302 = dma.vmem_to_hbm [thread:$0]  %s300_s12, 128, %s560_s3, [#allocation4]  }
 0x260   :  { %463 = dma.done.wait [#allocation4], 128  }
 0x261   :  { %464 = vsyncadd [#allocation4], 4294967168 }
 0x262   :  { %306 = vsyncpa [#allocation3], 1 }
 0x263   :  { %307 = vsyncpa [#allocation4], 1 }

</bundles_post_ra>
